<compile_context>
chip_gen: v5e
topology: v5e:2x2
jax: 0.10.0
libtpu: 0.0.40
codegen_flags: <defaults>
</compile_context>

<pallas_src>
import jax
import jax.numpy as jnp
from jax.experimental import pallas as pl
from jax.experimental.pallas import tpu as pltpu

LOG_STD_MIN = -24.0
LOG_STD_MAX = 2.4

_SINGLE_BLOCK_ROWS = 1024   # batches up to this run as one un-gridded block (latency path)
_MAX_TILE_ROWS = 1024       # batch tile ceiling for the gridded large-B path


def _policy_kernel(x_ref, w1_ref, b1_ref, wmu_ref, bmu_ref, wls_ref, bls_ref,
                   mu_ref, std_ref):
    """Backbone Linear+ReLU, then mu / std heads written to two separate outputs.

    x_ref  : (TB, S) f32
    w1_ref : (S,  H) f32,  b1_ref : (1, H) f32
    wmu_ref: (H,  O) f32,  bmu_ref: (1, O) f32
    wls_ref: (H,  O) f32,  bls_ref: (1, O) f32
    mu_ref : (TB, O) f32
    std_ref: (TB, O) f32
    """
    # Backbone: Linear(S->H) + ReLU. MXU is idle otherwise, so a single small dot is fine.
    h = jnp.dot(x_ref[...], w1_ref[...], preferred_element_type=jnp.float32) + b1_ref[...]
    h = jnp.maximum(h, 0.0)                                   # (TB, H)

    # mu head: pass-through.
    mu_ref[...] = jnp.dot(h, wmu_ref[...],
                          preferred_element_type=jnp.float32) + bmu_ref[...]

    # log_std head: clamp + exp only on these lanes (EUP), stored directly as std.
    ls = jnp.dot(h, wls_ref[...], preferred_element_type=jnp.float32) + bls_ref[...]
    std_ref[...] = jnp.exp(jnp.clip(ls, LOG_STD_MIN, LOG_STD_MAX))


def robot_policy_forward(x, params):
    """x: (B, state_size) f32 -> (action_mu, action_std), each (B, out_size) f32."""
    w1, b1, wmu, bmu, wls, bls = params
    B, S = x.shape
    H = w1.shape[1]
    O = wmu.shape[1]

    if x.dtype != jnp.float32:          # skip the astype when it's a no-op
        x = x.astype(jnp.float32)

    out_shapes = lambda rows: (jax.ShapeDtypeStruct((rows, O), jnp.float32),
                               jax.ShapeDtypeStruct((rows, O), jnp.float32))

    # ---- Latency path: one whole-array block, no grid / pipeline, no padding. ----
    if B <= _SINGLE_BLOCK_ROWS:
        mu, std = pl.pallas_call(
            _policy_kernel,
            out_shape=out_shapes(B),
        )(x, w1, b1, wmu, bmu, wls, bls)
        return mu, std

    # ---- Throughput path: batch tiled, >=2 balanced blocks (v7x megacore sharding). ----
    B8 = ((B + 7) // 8) * 8
    tile_b = min(_MAX_TILE_ROWS, ((pl.cdiv(B8, 2) + 7) // 8) * 8)
    Bp = pl.cdiv(B8, tile_b) * tile_b
    if Bp != B:
        x = jnp.pad(x, ((0, Bp - B), (0, 0)))
    grid = (Bp // tile_b,)

    cost = pl.CostEstimate(
        flops=2 * Bp * S * H + 2 * (2 * Bp * H * O),
        transcendentals=Bp * O,
        bytes_accessed=4 * (Bp * S + S * H + H + 2 * (H * O + O) + 2 * Bp * O),
    )

    mu, std = pl.pallas_call(
        _policy_kernel,
        out_shape=out_shapes(Bp),
        grid=grid,
        in_specs=[
            pl.BlockSpec((tile_b, S), lambda i: (i, 0)),   # x: tiled over batch
            pl.BlockSpec((S, H), lambda i: (0, 0)),        # w1: resident
            pl.BlockSpec((1, H), lambda i: (0, 0)),        # b1: resident
            pl.BlockSpec((H, O), lambda i: (0, 0)),        # wmu: resident
            pl.BlockSpec((1, O), lambda i: (0, 0)),        # bmu: resident
            pl.BlockSpec((H, O), lambda i: (0, 0)),        # wls: resident
            pl.BlockSpec((1, O), lambda i: (0, 0)),        # bls: resident
        ],
        out_specs=(pl.BlockSpec((tile_b, O), lambda i: (i, 0)),
                   pl.BlockSpec((tile_b, O), lambda i: (i, 0))),
        compiler_params=pltpu.CompilerParams(dimension_semantics=("parallel",)),
        cost_estimate=cost,
    )(x, w1, b1, wmu, bmu, wls, bls)

    if Bp != B:
        mu, std = mu[:B], std[:B]
    return mu, std


def init_params(key, state_size=3, hidden_size=32, out_size=7):
    """Deterministic PyTorch-style (uniform +/- 1/sqrt(fan_in)) init; weights stored (in, out)."""
    k1, k2, k3, k4, k5, k6 = jax.random.split(key, 6)

    def lin(kw, kb, fan_in, fan_out):
        bound = 1.0 / jnp.sqrt(jnp.float32(fan_in))
        w = jax.random.uniform(kw, (fan_in, fan_out), jnp.float32, -bound, bound)
        b = jax.random.uniform(kb, (1, fan_out), jnp.float32, -bound, bound)
        return w, b

    w1, b1 = lin(k1, k2, state_size, hidden_size)
    wmu, bmu = lin(k3, k4, hidden_size, out_size)
    wls, bls = lin(k5, k6, hidden_size, out_size)
    return (w1, b1, wmu, bmu, wls, bls)


def reference_forward(x, params):
    """Pure-JAX reference matching the PyTorch forward semantics."""
    w1, b1, wmu, bmu, wls, bls = params
    h = jnp.maximum(x @ w1 + b1, 0.0)
    mu = h @ wmu + bmu
    ls = jnp.clip(h @ wls + bls, LOG_STD_MIN, LOG_STD_MAX)
    return mu, jnp.exp(ls)


if __name__ == "__main__":
    key = jax.random.PRNGKey(0)
    kx, kp, kx2 = jax.random.split(key, 3)

    B, S, H, O = 8, 3, 32, 7
    x = jax.random.normal(kx, (B, S), dtype=jnp.float32)
    params = init_params(kp, state_size=S, hidden_size=H, out_size=O)

    # Small-batch (latency) path.
    mu, std = robot_policy_forward(x, params)
    jax.block_until_ready((mu, std))
    mu_ref, std_ref = reference_forward(x, params)
    assert mu.shape == (B, O) and std.shape == (B, O)
    assert jnp.allclose(mu, mu_ref, atol=1e-5, rtol=1e-5)
    assert jnp.allclose(std, std_ref, atol=1e-5, rtol=1e-5)
    assert bool(jnp.all(std > 0.0))

    # Large-batch (gridded, 2-block) path.
    B2 = 2048
    x2 = jax.random.normal(kx2, (B2, S), dtype=jnp.float32)
    mu2, std2 = robot_policy_forward(x2, params)
    jax.block_until_ready((mu2, std2))
    mu2_ref, std2_ref = reference_forward(x2, params)
    assert mu2.shape == (B2, O) and std2.shape == (B2, O)
    assert jnp.allclose(mu2, mu2_ref, atol=1e-4, rtol=1e-4)
    assert jnp.allclose(std2, std2_ref, atol=1e-4, rtol=1e-4)
    assert bool(jnp.all(std2 > 0.0))

    # TODO(synk): estimate_action (Normal rsample / log_prob / entropy / tanh) is a
    # sampling-time wrapper around forward(); not part of the kernel hot path here.
    print("KERNEL_OK")
</pallas_src>

<mosaic_0001>
module attributes {stable_mosaic.version = 11 : i64} {
  func.func @_policy_kernel(%arg0: memref<8x3xf32, #tpu.memory_space<vmem>>, %arg1: memref<3x32xf32, #tpu.memory_space<vmem>>, %arg2: memref<1x32xf32, #tpu.memory_space<vmem>>, %arg3: memref<32x7xf32, #tpu.memory_space<vmem>>, %arg4: memref<1x7xf32, #tpu.memory_space<vmem>>, %arg5: memref<32x7xf32, #tpu.memory_space<vmem>>, %arg6: memref<1x7xf32, #tpu.memory_space<vmem>>, %arg7: memref<8x7xf32, #tpu.memory_space<vmem>>, %arg8: memref<8x7xf32, #tpu.memory_space<vmem>>) attributes {dimension_semantics = [], scalar_prefetch = 0 : i64, scratch_operands = 0 : i64, tpu.core_type = #tpu.core_type<tc>} {
    %c0 = arith.constant 0 : index
    %c0_0 = arith.constant 0 : index
    %0 = vector.load %arg0[%c0, %c0_0] : memref<8x3xf32, #tpu.memory_space<vmem>>, vector<8x3xf32>
    %c0_1 = arith.constant 0 : index
    %c0_2 = arith.constant 0 : index
    %1 = vector.load %arg1[%c0_1, %c0_2] : memref<3x32xf32, #tpu.memory_space<vmem>>, vector<3x32xf32>
    %cst = arith.constant dense<0.000000e+00> : vector<8x32xf32>
    %2 = tpu.matmul %0, %1, %cst {dimension_numbers = #tpu.dot_dimension_numbers<[1], [0], [0], [1], [0, 0, 1, 1], [], []>} : vector<8x3xf32>, vector<3x32xf32>, vector<8x32xf32> -> vector<8x32xf32>
    %c0_3 = arith.constant 0 : index
    %c0_4 = arith.constant 0 : index
    %3 = vector.load %arg2[%c0_3, %c0_4] : memref<1x32xf32, #tpu.memory_space<vmem>>, vector<1x32xf32>
    %4 = vector.broadcast %3 : vector<1x32xf32> to vector<8x32xf32>
    %5 = arith.addf %2, %4 : vector<8x32xf32>
    %cst_5 = arith.constant 0.000000e+00 : f32
    %6 = vector.broadcast %cst_5 : f32 to vector<8x32xf32>
    %7 = arith.maximumf %5, %6 : vector<8x32xf32>
    %c0_6 = arith.constant 0 : index
    %c0_7 = arith.constant 0 : index
    %8 = vector.load %arg3[%c0_6, %c0_7] : memref<32x7xf32, #tpu.memory_space<vmem>>, vector<32x7xf32>
    %cst_8 = arith.constant dense<0.000000e+00> : vector<8x7xf32>
    %9 = tpu.matmul %7, %8, %cst_8 {dimension_numbers = #tpu.dot_dimension_numbers<[1], [0], [0], [1], [0, 0, 1, 1], [], []>} : vector<8x32xf32>, vector<32x7xf32>, vector<8x7xf32> -> vector<8x7xf32>
    %c0_9 = arith.constant 0 : index
    %c0_10 = arith.constant 0 : index
    %10 = vector.load %arg4[%c0_9, %c0_10] : memref<1x7xf32, #tpu.memory_space<vmem>>, vector<1x7xf32>
    %11 = vector.broadcast %10 : vector<1x7xf32> to vector<8x7xf32>
    %12 = arith.addf %9, %11 : vector<8x7xf32>
    %c0_11 = arith.constant 0 : index
    %c0_12 = arith.constant 0 : index
    %13 = vector.load %arg7[%c0_11, %c0_12] : memref<8x7xf32, #tpu.memory_space<vmem>>, vector<8x7xf32>
    tpu.vector_store %arg7[%c0_11, %c0_12], %12 {strides = array<i32>} : memref<8x7xf32, #tpu.memory_space<vmem>>, vector<8x7xf32>,
    %c0_13 = arith.constant 0 : index
    %c0_14 = arith.constant 0 : index
    %14 = vector.load %arg5[%c0_13, %c0_14] : memref<32x7xf32, #tpu.memory_space<vmem>>, vector<32x7xf32>
    %cst_15 = arith.constant dense<0.000000e+00> : vector<8x7xf32>
    %15 = tpu.matmul %7, %14, %cst_15 {dimension_numbers = #tpu.dot_dimension_numbers<[1], [0], [0], [1], [0, 0, 1, 1], [], []>} : vector<8x32xf32>, vector<32x7xf32>, vector<8x7xf32> -> vector<8x7xf32>
    %c0_16 = arith.constant 0 : index
    %c0_17 = arith.constant 0 : index
    %16 = vector.load %arg6[%c0_16, %c0_17] : memref<1x7xf32, #tpu.memory_space<vmem>>, vector<1x7xf32>
    %17 = vector.broadcast %16 : vector<1x7xf32> to vector<8x7xf32>
    %18 = arith.addf %15, %17 : vector<8x7xf32>
    %cst_18 = arith.constant -2.400000e+01 : f32
    %cst_19 = arith.constant 2.400000e+00 : f32
    %19 = vector.broadcast %cst_18 : f32 to vector<8x7xf32>
    %20 = arith.maximumf %19, %18 : vector<8x7xf32>
    %21 = vector.broadcast %cst_19 : f32 to vector<8x7xf32>
    %22 = arith.minimumf %21, %20 : vector<8x7xf32>
    %23 = math.exp %22 : vector<8x7xf32>
    %c0_20 = arith.constant 0 : index
    %c0_21 = arith.constant 0 : index
    %24 = vector.load %arg8[%c0_20, %c0_21] : memref<8x7xf32, #tpu.memory_space<vmem>>, vector<8x7xf32>
    tpu.vector_store %arg8[%c0_20, %c0_21], %23 {strides = array<i32>} : memref<8x7xf32, #tpu.memory_space<vmem>>, vector<8x7xf32>,
    return
  }
}

</mosaic_0001>

<bundles_post_ra>
// kernel: tpu_custom_call.1
= control target key start
LH: loop header
LB: loop body
LE: loop exit
PB: predicated region body
PF: predicated region fallthrough
CT: control target
= control target key end

     0   :  { %14 = vsyncpa [#allocation3], 0  ;;  %vm40_vm0 = vcmask 1042432   ;;  %vm36_vm1 = vcmask 23552   ;;  %s321_s0 = inlined_call_operand.vmem [shape: f32[8,3], index: 0, kind: input, shape index: {}]   ;;  %s322_s1 = inlined_call_operand.vmem [shape: f32[3,32], index: 1, kind: input, shape index: {}]   ;;  %s323_s2 = inlined_call_operand.vmem [shape: f32[1,32], index: 2, kind: input, shape index: {}]   ;;  %s324_s3 = inlined_call_operand.vmem [shape: f32[32,7], index: 3, kind: input, shape index: {}]   ;;  %s325_s4 = inlined_call_operand.vmem [shape: f32[1,7], index: 4, kind: input, shape index: {}]   ;;  %s326_s5 = inlined_call_operand.vmem [shape: f32[32,7], index: 5, kind: input, shape index: {}]   ;;  %s327_s6 = inlined_call_operand.vmem [shape: f32[1,7], index: 6, kind: input, shape index: {}]   ;;  %s328_s7 = inlined_call_operand.hbm [shape: f32[8,7], index: 7, kind: output, shape index: {0}]   ;;  %s329_s8 = inlined_call_operand.hbm [shape: f32[8,7], index: 8, kind: output, shape index: {1}]  }
   0x1   :  { %v31_v0 = vld [vmem:[%s322_s1] sm:$0x7]  ;;  %v68_v2 = vld [vmem:[%s324_s3 + $0x18] sm:$0xff] }
   0x2   :  { %v30_v1 = vld [vmem:[%s321_s0] sm:$0xff]  ;;  %164 = vmatpush.msk.msra.mxu0 %vm40_vm0, %v31_v0  ;;  %89 = vmatpush.msra.mxu1 %v68_v2  ;;  %v102_v3 = vld [vmem:[%s326_s5 + $0x18] sm:$0xff] }
   0x3   :  { %165 = vmatmul.msk.f32.vlgmr.msra.gmra.mxu0 %vm36_vm1, %v30_v1  ;;  %119 = vmatpush.msra.mxu2 %v102_v3 }
   0x4   :  { %15 = vsyncpa [#allocation5], 0  ;;  %v67_v4 = vld [vmem:[%s324_s3 + $0x10] sm:$0xff]  ;;  %v66_v6 = vld [vmem:[%s324_s3 + $0x8] sm:$0xff]  ;;  %vm73_vm2 = vcmask 261120   ;;  %s139_s29 = sshll.u32 %s328_s7, 4  ;;  %s140_s29 = int_to_ptr.hbm [resolvable:$true] %s139_s29 }
   0x5   :  { %v101_v5 = vld [vmem:[%s326_s5 + $0x10] sm:$0xff]  ;;  %90 = vmatpush.msra.mxu1 %v67_v4  ;;  %v100_v7 = vld [vmem:[%s326_s5 + $0x8] sm:$0xff]  ;;  %v65_v8 = vld [vmem:[%s324_s3] sm:$0xff]  ;;  %s227_s3 = smov [#allocation2]   ;;  %vm97_vm3 = vcmask 56320   ;;  %s150_s11 = sshll.u32 %s329_s8, 4  ;;  %s151_s11 = int_to_ptr.hbm [resolvable:$true] %s150_s11 }
   0x6   :  { %120 = vmatpush.msra.mxu2 %v101_v5  ;;  %v99_v9 = vld [vmem:[%s326_s5] sm:$0xff]  ;;  %s137_s27 = sshll.u32 %s227_s3, 4  ;;  %s138_s27 = int_to_ptr.vmem [resolvable:$true] %s137_s27 }
   0x7   :  { %91 = vmatpush.msra.mxu1 %v66_v6  ;;  %v170_v10 = vld [vmem:[%s323_s2] ss:$0 sm:$0xff] }
   0x8   :  { %121 = vmatpush.msra.mxu2 %v100_v7  ;;  %v171_v14 = vld [vmem:[%s325_s4] ss:$0 sm:$0xff]  ;;  %s228_s4 = smov [#allocation4]  }
   0x9   :  { %92 = vmatpush.msra.mxu1 %v65_v8  ;;  %v172_v17 = vld [vmem:[%s327_s6] ss:$0 sm:$0xff]  ;;  %s148_s7 = sshll.u32 %s228_s4, 4  ;;  %s149_s7 = int_to_ptr.vmem [resolvable:$true] %s148_s7 }
   0xa   :  { %122 = vmatpush.msra.mxu2 %v99_v9 }
  0x80   :  { %v61_v11 = vpop.f32.mrf.mxu0 }
  0x81   :  { %v62_v12 = vadd.f32 %v170_v10, %v61_v11 }
  0x83   :  { %v64_v13 = vmax.f32 %v62_v12, 0.0 }
  0x85   :  { %166 = vmatmul.msk.f32.vlgmr.msra.gmra.mxu1 %vm73_vm2, %v64_v13  ;;  %167 = vmatmul.msk.f32.vlgmr.msra.gmra.mxu2 %vm73_vm2, %v64_v13 }
 0x102   :  { %v94_v15 = vpop.f32.mrf.mxu1 }
 0x103   :  { %v95_v16 = vadd.f32 %v171_v14, %v94_v15 }
 0x105   :  { %98 = vst.msk [vmem:[#allocation2] sm:$0xff] %vm97_vm3, %v95_v16 }
 0x106   :  { %142 = dma.vmem_to_hbm [thread:$0]  %s138_s27, 128, %s140_s29, [#allocation3]  }
 0x108   :  { %v124_v18 = vpop.f32.mrf.mxu2 }
 0x109   :  { %v125_v19 = vadd.f32 %v172_v17, %v124_v18 }
 0x10b   :  { %v127_v20 = vmax.f32 %v125_v19, -24.0 }
 0x10d   :  { %v128_v21 = vmin.f32 %v127_v20, 2.4 }
 0x10f   :  { %v129_v22 = vmul.f32 1.442695, %v128_v21 }
 0x111   :  { %173 = vpow2.f32 %v129_v22 }
 0x117   :  { %v174_v23 = vpop.eup %173 }
 0x118   :  { %131 = vst.msk [vmem:[#allocation4] sm:$0xff] %vm97_vm3, %v174_v23 }
 0x119   :  { %153 = dma.vmem_to_hbm [thread:$0]  %s149_s7, 128, %s151_s11, [#allocation5]  }
 0x11a   :  { %223 = dma.done.wait [#allocation3], 128  }
 0x11b   :  { %224 = vsyncadd [#allocation3], 4294967168 }
 0x11c   :  { %225 = dma.done.wait [#allocation5], 128  }
 0x11d   :  { %226 = vsyncadd [#allocation5], 4294967168 }
 0x11e   :  { %162 = vsyncpa [#allocation3], 1 }
 0x11f   :  { %163 = vsyncpa [#allocation5], 1 }

</bundles_post_ra>
